<compile_context>
chip_gen: v5e
topology: v5e:2x2
jax: 0.10.0
libtpu: 0.0.40
codegen_flags: <defaults>
</compile_context>

<pallas_src>
import functools

import jax
import jax.numpy as jnp
from jax import lax
from jax.experimental import pallas as pl
from jax.experimental.pallas import tpu as pltpu


def _round_up(a, m):
    return (a + m - 1) // m * m


def _device_kind():
    try:
        return jax.devices()[0].device_kind.lower()
    except Exception:
        return ""


def _vmem_capacity_bytes(kind):
    try:
        return int(pltpu.get_tpu_info().vmem_capacity_bytes)
    except Exception:
        return (64 << 20) if ("v7" in kind or "7x" in kind) else (128 << 20)


def _choose_l_tile(L, cp, wp, *, target, budget_bytes):
    """Pick an L tile (multiple of 8) near `target` with a bounded per-step VMEM footprint."""
    nt = max(1, -(-L // target))
    while True:
        tl = _round_up(-(-L // nt), 8)
        foot = (4 * tl * cp * 2                          # double-buffered bf16 x + out tiles
                + tl * (6 * wp * 4 + 3 * wp * 2 + 2 * cp * 4))  # rough f32/bf16 temporaries
        if foot <= budget_bytes or tl <= 8:
            return tl, nt * tl
        nt += 1


def _bottleneck_kernel(x_ref, halo_ref, w1_ref, w2_ref, w3_ref,
                       b1_ref, b2_ref, b3_ref, o_ref,
                       *, L, TL, l_axis, mask_tail, fuse_conv2):
    """One grid step = one (TL, Cp) slab of one batch element."""
    j = pl.program_id(l_axis)       # L-tile index
    bf16, f32 = jnp.bfloat16, jnp.float32

    x = x_ref[0]                    # (TL, Cp)  bf16  (also the residual identity)
    halo = halo_ref[0, 0]           # (8, Cp)   bf16  (row 0 = prev x row, row 1 = next x row)

    row = lax.broadcasted_iota(jnp.int32, (TL, 1), 0)

    # ---- conv1 (1x1, bn1 scale folded into w1) + bias + ReLU ----------------
    h1 = jnp.dot(x, w1_ref[...], preferred_element_type=f32)          # (TL, Wp) f32
    h1 = jnp.maximum(h1 + b1_ref[...], 0.0)
    if mask_tail:
        # rows with global index >= L are conv2's zero padding of h1
        h1 = jnp.where(j * TL + row < L, h1, 0.0)

    # conv1 of the two halo rows; zero whenever the global h1 index is outside [0, L)
    h1h = jnp.dot(halo, w1_ref[...], preferred_element_type=f32)      # (8, Wp)
    h1h = jnp.maximum(h1h + b1_ref[...], 0.0)
    prev_row = jnp.where(j > 0, h1h[0:1], 0.0)                        # h1[j*TL - 1]
    next_row = jnp.where(j * TL + TL < L, h1h[1:2], 0.0)              # h1[j*TL + TL]

    # ---- shifted neighbours via XLU roll, boundary rows patched --------------
    prev = pltpu.roll(h1, shift=1, axis=0)            # row i <- h1[i-1]
    prev = jnp.where(row == 0, prev_row, prev)
    nxt = pltpu.roll(h1, shift=TL - 1, axis=0)        # row i <- h1[i+1]
    nxt = jnp.where(row == TL - 1, next_row, nxt)

    # ---- conv2 (k=3, pad=1, bn2 folded) + bias + ReLU ------------------------
    if fuse_conv2:
        h_cat = jnp.concatenate(
            [prev.astype(bf16), h1.astype(bf16), nxt.astype(bf16)], axis=-1)  # (TL, 3*Wp)
        h2 = jnp.dot(h_cat, w2_ref[...], preferred_element_type=f32)
    else:
        h2 = jnp.dot(prev.astype(bf16), w2_ref[0], preferred_element_type=f32)
        h2 = h2 + jnp.dot(h1.astype(bf16), w2_ref[1], preferred_element_type=f32)
        h2 = h2 + jnp.dot(nxt.astype(bf16), w2_ref[2], preferred_element_type=f32)
    h2 = jnp.maximum(h2 + b2_ref[...], 0.0)

    # ---- conv3 (1x1, bn3 folded) + bias + residual + ReLU --------------------
    h3 = jnp.dot(h2.astype(bf16), w3_ref[...], preferred_element_type=f32)     # (TL, Cp)
    o_ref[0] = jnp.maximum(h3 + b3_ref[...] + x.astype(f32), 0.0).astype(o_ref.dtype)


def bottleneck_pallas(x_nlc, params, *, l_tile_target=None):
    """x_nlc: (N, L, C_in) float32/bfloat16.  Returns (N, L, C_out) bf16, C_out == C_in."""
    N, L, Cin = x_nlc.shape
    w1, w2, w3 = params["w1"], params["w2"], params["w3"]
    W = w1.shape[1]
    Cout = w3.shape[1]
    assert Cout == Cin, "downsample is None -> residual requires C_out == C_in"
    f32, bf16 = jnp.float32, jnp.bfloat16

    Cp = _round_up(Cin, 128)        # padded channel dim (Cin == Cout)
    Wp = _round_up(W, 128)          # padded bottleneck width

    kind = _device_kind()
    vmem_cap = _vmem_capacity_bytes(kind)
    is_v5 = "v5" in kind
    fuse_conv2 = (Wp < 256) and (not is_v5)

    if l_tile_target is None:
        l_tile_target = 512 if vmem_cap <= (64 << 20) else 1024
    tile_budget = (vmem_cap * 2) // 5
    TL, Lp = _choose_l_tile(L, Cp, Wp, target=l_tile_target, budget_bytes=tile_budget)
    nt = Lp // TL

    # ---- fold BN scales into the weights, pad lane-dense, cast to bf16 ------
    def pad_to(a, shape):
        return jnp.pad(a, [(0, t - s) for s, t in zip(a.shape, shape)])

    w1p = pad_to(w1 * params["s1"], (Cp, Wp)).astype(bf16)                    # (Cp, Wp)
    w2p3 = pad_to(w2 * params["s2"], (3, Wp, Wp)).astype(bf16)                # (3, Wp, Wp)
    w2p = w2p3.reshape(3 * Wp, Wp) if fuse_conv2 else w2p3
    w3p = pad_to(w3 * params["s3"], (Wp, Cp)).astype(bf16)                    # (Wp, Cp)
    b1p = pad_to(params["b1"].astype(f32), (1, Wp))
    b2p = pad_to(params["b2"].astype(f32), (1, Wp))
    b3p = pad_to(params["b3"].astype(f32), (1, Cp))

    # ---- activations in bf16; pad only when actually needed -----------------
    x_b = x_nlc if x_nlc.dtype == bf16 else x_nlc.astype(bf16)
    if Lp != L or Cp != Cin:
        x_p = jnp.pad(x_b, ((0, 0), (0, Lp - L), (0, Cp - Cin)))
    else:
        x_p = x_b

    # ---- per-tile 1-row halos via clamped gather (row 0=prev, row 1=next) ---
    # Out-of-range halos carry garbage; the kernel zeroes their h1 (conv2 pad).
    starts = jnp.arange(nt, dtype=jnp.int32) * TL
    prev_idx = jnp.clip(starts - 1, 0, Lp - 1)
    next_idx = jnp.clip(starts + TL, 0, Lp - 1)
    halo = jnp.stack([x_p[:, prev_idx, :], x_p[:, next_idx, :]], axis=2)   # (N, nt, 2, Cp)
    halo = jnp.pad(halo, ((0, 0), (0, 0), (0, 6), (0, 0)))                 # -> (N, nt, 8, Cp)

    # ---- grid: put the larger parallel axis first (v7x megacore split) ------
    if nt >= N:
        grid = (nt, N)
        xmap = lambda j, n: (n, j, 0)
        hmap = lambda j, n: (n, j, 0, 0)
        l_axis = 0
    else:
        grid = (N, nt)
        xmap = lambda n, j: (n, j, 0)
        hmap = lambda n, j: (n, j, 0, 0)
        l_axis = 1

    vmem_in = pl.BlockSpec(memory_space=pltpu.MemorySpace.VMEM)   # untiled, single-buffered
    in_specs = [
        pl.BlockSpec((1, TL, Cp), xmap),          # x tile (bf16)
        pl.BlockSpec((1, 1, 8, Cp), hmap),        # halo rows (bf16)
        vmem_in, vmem_in, vmem_in,                # w1, w2, w3
        vmem_in, vmem_in, vmem_in,                # b1, b2, b3
    ]
    out_spec = pl.BlockSpec((1, TL, Cp), xmap)

    flops = 2 * N * Lp * Wp * (2 * Cp + 3 * Wp)
    bytes_accessed = ((x_p.size + halo.size + N * Lp * Cp) * 2
                      + (w1p.size + w2p.size + w3p.size) * 2
                      + (b1p.size + b2p.size + b3p.size) * 4)

    weights_b = (w1p.size + w2p.size + w3p.size) * 2 + (b1p.size + b2p.size + b3p.size) * 4
    stream_b = 2 * (2 * TL * Cp * 2 + 8 * Cp * 2)                 # double-buffered bf16 tiles
    temps_b = TL * (6 * Wp * 4 + 3 * Wp * 2 + 2 * Cp * 4)
    cap = int(vmem_cap * 0.82)                                    # headroom for compiler scratch
    vmem_limit = int(min(max(weights_b + stream_b + temps_b + (4 << 20), 32 << 20), cap))

    out_p = pl.pallas_call(
        functools.partial(_bottleneck_kernel, L=L, TL=TL, l_axis=l_axis,
                          mask_tail=(Lp != L), fuse_conv2=fuse_conv2),
        out_shape=jax.ShapeDtypeStruct((N, Lp, Cp), bf16),
        grid=grid,
        in_specs=in_specs,
        out_specs=out_spec,
        compiler_params=pltpu.CompilerParams(
            dimension_semantics=("parallel", "parallel"),
            vmem_limit_bytes=vmem_limit),
        cost_estimate=pl.CostEstimate(flops=int(flops), transcendentals=0,
                                      bytes_accessed=int(bytes_accessed)),
    )(x_p, halo, w1p, w2p, w3p, b1p, b2p, b3p)

    if Lp != L or Cp != Cout:
        return out_p[:, :L, :Cout]
    return out_p


def _fold_bn(gamma, beta, mean, var, eps=1e-5):
    s = gamma / jnp.sqrt(var + eps)
    b = beta - mean * s
    return s[None, :], b[None, :]


def make_params(key, inplanes, planes, base_width=64, groups=1):
    """Deterministic synthetic parameters matching Bottleneck.__init__ shapes."""
    width = int(planes * (base_width / 64.0)) * groups
    cout = planes * 4  # expansion = 4
    ks = jax.random.split(key, 15)

    # PyTorch conv weights are (out, in, k); pre-transpose for channels-last matmuls.
    w1_t = 0.1 * jax.random.normal(ks[0], (width, inplanes, 1), jnp.float32)
    w2_t = 0.1 * jax.random.normal(ks[1], (width, width, 3), jnp.float32)
    w3_t = 0.1 * jax.random.normal(ks[2], (cout, width, 1), jnp.float32)
    w1 = jnp.transpose(w1_t[:, :, 0])            # (Cin, W)
    w2 = jnp.transpose(w2_t, (2, 1, 0))          # (3, W_in, W_out): w2[k, cin, cout]
    w3 = jnp.transpose(w3_t[:, :, 0])            # (W, Cout)

    def bn(k0, k1, k2, k3, c):
        gamma = 1.0 + 0.1 * jax.random.normal(k0, (c,), jnp.float32)
        beta = 0.1 * jax.random.normal(k1, (c,), jnp.float32)
        mean = 0.1 * jax.random.normal(k2, (c,), jnp.float32)
        var = jnp.abs(jax.random.normal(k3, (c,), jnp.float32)) + 0.5
        return _fold_bn(gamma, beta, mean, var)

    s1, b1 = bn(ks[3], ks[4], ks[5], ks[6], width)
    s2, b2 = bn(ks[7], ks[8], ks[9], ks[10], width)
    s3, b3 = bn(ks[11], ks[12], ks[13], ks[14], cout)
    return dict(w1=w1, w2=w2, w3=w3, s1=s1, b1=b1, s2=s2, b2=b2, s3=s3, b3=b3)


def bottleneck_reference(x_nlc, p):
    """Pure-JAX eval-mode forward with matching bf16-matmul precision (for verification)."""
    bf16, f32 = jnp.bfloat16, jnp.float32
    w1 = (p["w1"] * p["s1"]).astype(bf16)
    w2 = (p["w2"] * p["s2"]).astype(bf16)
    w3 = (p["w3"] * p["s3"]).astype(bf16)
    xb = x_nlc.astype(bf16)
    h1 = jnp.einsum("nlc,cw->nlw", xb, w1, preferred_element_type=f32) + p["b1"]
    h1 = jnp.maximum(h1, 0.0)
    hp = jnp.pad(h1, ((0, 0), (1, 1), (0, 0))).astype(bf16)
    h2 = (jnp.einsum("nlc,cw->nlw", hp[:, :-2], w2[0], preferred_element_type=f32)
          + jnp.einsum("nlc,cw->nlw", hp[:, 1:-1], w2[1], preferred_element_type=f32)
          + jnp.einsum("nlc,cw->nlw", hp[:, 2:], w2[2], preferred_element_type=f32))
    h2 = jnp.maximum(h2 + p["b2"], 0.0)
    h3 = jnp.einsum("nlw,wc->nlc", h2.astype(bf16), w3, preferred_element_type=f32) + p["b3"]
    return jnp.maximum(h3 + xb.astype(f32), 0.0)


if __name__ == "__main__":
    # Small shapes consistent with the module: inplanes = planes * expansion so the
    # residual add works with downsample=None.  L=24 with a 16-row L tile exercises
    # the multi-tile halo, roll-patch and tail-padding paths.
    N, L = 2, 24
    planes = 4
    inplanes = planes * 4   # 16 channels

    key = jax.random.PRNGKey(0)
    kx, kp = jax.random.split(key)

    x_ncl = jax.random.normal(kx, (N, inplanes, L), jnp.float32)   # PyTorch layout (N, C, L)
    params = make_params(kp, inplanes, planes)

    x_nlc = jnp.transpose(x_ncl, (0, 2, 1))                        # kernel layout (N, L, C)
    out_nlc = bottleneck_pallas(x_nlc, params, l_tile_target=16)
    out_ncl = jnp.transpose(out_nlc.astype(jnp.float32), (0, 2, 1))  # back to (N, C, L)
    out_ncl = jax.block_until_ready(out_ncl)

    ref_ncl = jnp.transpose(bottleneck_reference(x_nlc, params), (0, 2, 1))
    assert out_ncl.shape == x_ncl.shape
    assert jnp.allclose(out_ncl, ref_ncl, rtol=2e-2, atol=2e-2), "mismatch vs JAX reference"

    print("KERNEL_OK")
</pallas_src>

<mosaic_0001>
module attributes {stable_mosaic.version = 11 : i64} {
  func.func @_bottleneck_kernel(%arg0: i32, %arg1: i32, %arg2: memref<1x16x128xbf16, #tpu.memory_space<vmem>>, %arg3: memref<1x1x8x128xbf16, #tpu.memory_space<vmem>>, %arg4: memref<128x128xbf16, #tpu.memory_space<vmem>>, %arg5: memref<384x128xbf16, #tpu.memory_space<vmem>>, %arg6: memref<128x128xbf16, #tpu.memory_space<vmem>>, %arg7: memref<1x128xf32, #tpu.memory_space<vmem>>, %arg8: memref<1x128xf32, #tpu.memory_space<vmem>>, %arg9: memref<1x128xf32, #tpu.memory_space<vmem>>, %arg10: memref<1x16x128xbf16, #tpu.memory_space<vmem>>) attributes {dimension_semantics = [#tpu.dimension_semantics<parallel>, #tpu.dimension_semantics<parallel>], iteration_bounds = array<i64: 2, 2>, scalar_prefetch = 0 : i64, scratch_operands = 0 : i64, tpu.core_type = #tpu.core_type<tc>, window_params = [{transform_indices = @transform_0, window_bounds = array<i64: 1, 16, 128>}, {transform_indices = @transform_1, window_bounds = array<i64: 1, 1, 8, 128>}, {pipeline_mode = #tpu.pipeline_mode<synchronous>, transform_indices = @transform_2, window_bounds = array<i64: 128, 128>}, {pipeline_mode = #tpu.pipeline_mode<synchronous>, transform_indices = @transform_3, window_bounds = array<i64: 384, 128>}, {pipeline_mode = #tpu.pipeline_mode<synchronous>, transform_indices = @transform_4, window_bounds = array<i64: 128, 128>}, {pipeline_mode = #tpu.pipeline_mode<synchronous>, transform_indices = @transform_5, window_bounds = array<i64: 1, 128>}, {pipeline_mode = #tpu.pipeline_mode<synchronous>, transform_indices = @transform_6, window_bounds = array<i64: 1, 128>}, {pipeline_mode = #tpu.pipeline_mode<synchronous>, transform_indices = @transform_7, window_bounds = array<i64: 1, 128>}, {transform_indices = @transform_8, window_bounds = array<i64: 1, 16, 128>}]} {
    %c0 = arith.constant 0 : index
    %c0_0 = arith.constant 0 : index
    %c0_1 = arith.constant 0 : index
    %0 = vector.load %arg2[%c0, %c0_0, %c0_1] : memref<1x16x128xbf16, #tpu.memory_space<vmem>>, vector<1x16x128xbf16>
    %1 = vector.shape_cast %0 : vector<1x16x128xbf16> to vector<16x128xbf16>
    %c0_2 = arith.constant 0 : index
    %c0_3 = arith.constant 0 : index
    %c0_4 = arith.constant 0 : index
    %c0_5 = arith.constant 0 : index
    %2 = vector.load %arg3[%c0_2, %c0_3, %c0_4, %c0_5] : memref<1x1x8x128xbf16, #tpu.memory_space<vmem>>, vector<1x1x8x128xbf16>
    %3 = vector.shape_cast %2 : vector<1x1x8x128xbf16> to vector<8x128xbf16>
    %4 = tpu.iota {dimensions = array<i32: 0>} : vector<16x1xi32>
    %c0_6 = arith.constant 0 : index
    %c0_7 = arith.constant 0 : index
    %5 = vector.load %arg4[%c0_6, %c0_7] : memref<128x128xbf16, #tpu.memory_space<vmem>>, vector<128x128xbf16>
    %cst = arith.constant dense<0.000000e+00> : vector<16x128xf32>
    %6 = tpu.matmul %1, %5, %cst {dimension_numbers = #tpu.dot_dimension_numbers<[1], [0], [0], [1], [0, 0, 1, 1], [], []>} : vector<16x128xbf16>, vector<128x128xbf16>, vector<16x128xf32> -> vector<16x128xf32>
    %c0_8 = arith.constant 0 : index
    %c0_9 = arith.constant 0 : index
    %7 = vector.load %arg7[%c0_8, %c0_9] : memref<1x128xf32, #tpu.memory_space<vmem>>, vector<1x128xf32>
    %8 = vector.broadcast %7 : vector<1x128xf32> to vector<16x128xf32>
    %9 = arith.addf %6, %8 : vector<16x128xf32>
    %cst_10 = arith.constant 0.000000e+00 : f32
    %10 = vector.broadcast %cst_10 : f32 to vector<16x128xf32>
    %11 = arith.maximumf %9, %10 : vector<16x128xf32>
    %c16_i32 = arith.constant 16 : i32
    %12 = arith.muli %arg0, %c16_i32 : i32
    %13 = vector.broadcast %12 : i32 to vector<16x1xi32>
    %14 = arith.addi %13, %4 : vector<16x1xi32>
    %c24_i32 = arith.constant 24 : i32
    %15 = vector.broadcast %c24_i32 : i32 to vector<16x1xi32>
    %16 = arith.cmpi slt, %14, %15 : vector<16x1xi32>
    %cst_11 = arith.constant 0.000000e+00 : f32
    %17 = vector.shape_cast %16 : vector<16x1xi1> to vector<16x1xi1>
    %18 = vector.broadcast %17 : vector<16x1xi1> to vector<16x128xi1>
    %19 = vector.broadcast %cst_11 : f32 to vector<16x128xf32>
    %20 = arith.select %18, %11, %19 : vector<16x128xi1>, vector<16x128xf32>
    %c0_12 = arith.constant 0 : index
    %c0_13 = arith.constant 0 : index
    %21 = vector.load %arg4[%c0_12, %c0_13] : memref<128x128xbf16, #tpu.memory_space<vmem>>, vector<128x128xbf16>
    %cst_14 = arith.constant dense<0.000000e+00> : vector<8x128xf32>
    %22 = tpu.matmul %3, %21, %cst_14 {dimension_numbers = #tpu.dot_dimension_numbers<[1], [0], [0], [1], [0, 0, 1, 1], [], []>} : vector<8x128xbf16>, vector<128x128xbf16>, vector<8x128xf32> -> vector<8x128xf32>
    %c0_15 = arith.constant 0 : index
    %c0_16 = arith.constant 0 : index
    %23 = vector.load %arg7[%c0_15, %c0_16] : memref<1x128xf32, #tpu.memory_space<vmem>>, vector<1x128xf32>
    %24 = vector.broadcast %23 : vector<1x128xf32> to vector<8x128xf32>
    %25 = arith.addf %22, %24 : vector<8x128xf32>
    %cst_17 = arith.constant 0.000000e+00 : f32
    %26 = vector.broadcast %cst_17 : f32 to vector<8x128xf32>
    %27 = arith.maximumf %25, %26 : vector<8x128xf32>
    %c0_i32 = arith.constant 0 : i32
    %28 = arith.cmpi sgt, %arg0, %c0_i32 : i32
    %29 = vector.extract_strided_slice %27 {offsets = [0, 0], sizes = [1, 128], strides = [1, 1]} : vector<8x128xf32> to vector<1x128xf32>
    %cst_18 = arith.constant 0.000000e+00 : f32
    %30 = vector.broadcast %cst_18 : f32 to vector<1x128xf32>
    %31 = arith.select %28, %29, %30 : vector<1x128xf32>
    %c16_i32_19 = arith.constant 16 : i32
    %32 = arith.muli %arg0, %c16_i32_19 : i32
    %c16_i32_20 = arith.constant 16 : i32
    %33 = arith.addi %32, %c16_i32_20 : i32
    %c24_i32_21 = arith.constant 24 : i32
    %34 = arith.cmpi slt, %33, %c24_i32_21 : i32
    %35 = vector.extract_strided_slice %27 {offsets = [1, 0], sizes = [1, 128], strides = [1, 1]} : vector<8x128xf32> to vector<1x128xf32>
    %cst_22 = arith.constant 0.000000e+00 : f32
    %36 = vector.broadcast %cst_22 : f32 to vector<1x128xf32>
    %37 = arith.select %34, %35, %36 : vector<1x128xf32>
    %c1_i32 = arith.constant 1 : i32
    %38 = tpu.dynamic_rotate %20 by %c1_i32 dim 0 : vector<16x128xf32>, i32 -> vector<16x128xf32>
    %c0_i32_23 = arith.constant 0 : i32
    %39 = vector.broadcast %c0_i32_23 : i32 to vector<16x1xi32>
    %40 = arith.cmpi eq, %4, %39 : vector<16x1xi32>
    %41 = vector.shape_cast %40 : vector<16x1xi1> to vector<16x1xi1>
    %42 = vector.broadcast %41 : vector<16x1xi1> to vector<16x128xi1>
    %43 = vector.shape_cast %31 : vector<1x128xf32> to vector<1x128xf32>
    %44 = vector.broadcast %43 : vector<1x128xf32> to vector<16x128xf32>
    %45 = arith.select %42, %44, %38 : vector<16x128xi1>, vector<16x128xf32>
    %c15_i32 = arith.constant 15 : i32
    %46 = tpu.dynamic_rotate %20 by %c15_i32 dim 0 : vector<16x128xf32>, i32 -> vector<16x128xf32>
    %c15_i32_24 = arith.constant 15 : i32
    %47 = vector.broadcast %c15_i32_24 : i32 to vector<16x1xi32>
    %48 = arith.cmpi eq, %4, %47 : vector<16x1xi32>
    %49 = vector.shape_cast %48 : vector<16x1xi1> to vector<16x1xi1>
    %50 = vector.broadcast %49 : vector<16x1xi1> to vector<16x128xi1>
    %51 = vector.shape_cast %37 : vector<1x128xf32> to vector<1x128xf32>
    %52 = vector.broadcast %51 : vector<1x128xf32> to vector<16x128xf32>
    %53 = arith.select %50, %52, %46 : vector<16x128xi1>, vector<16x128xf32>
    %54 = arith.truncf %45 : vector<16x128xf32> to vector<16x128xbf16>
    %55 = arith.truncf %20 : vector<16x128xf32> to vector<16x128xbf16>
    %56 = arith.truncf %53 : vector<16x128xf32> to vector<16x128xbf16>
    %57 = tpu.concatenate %54, %55, %56 in 1 : vector<16x128xbf16>, vector<16x128xbf16>, vector<16x128xbf16> -> vector<16x384xbf16>
    %c0_25 = arith.constant 0 : index
    %c0_26 = arith.constant 0 : index
    %58 = vector.load %arg5[%c0_25, %c0_26] : memref<384x128xbf16, #tpu.memory_space<vmem>>, vector<384x128xbf16>
    %cst_27 = arith.constant dense<0.000000e+00> : vector<16x128xf32>
    %59 = tpu.matmul %57, %58, %cst_27 {dimension_numbers = #tpu.dot_dimension_numbers<[1], [0], [0], [1], [0, 0, 1, 1], [], []>} : vector<16x384xbf16>, vector<384x128xbf16>, vector<16x128xf32> -> vector<16x128xf32>
    %c0_28 = arith.constant 0 : index
    %c0_29 = arith.constant 0 : index
    %60 = vector.load %arg8[%c0_28, %c0_29] : memref<1x128xf32, #tpu.memory_space<vmem>>, vector<1x128xf32>
    %61 = vector.broadcast %60 : vector<1x128xf32> to vector<16x128xf32>
    %62 = arith.addf %59, %61 : vector<16x128xf32>
    %cst_30 = arith.constant 0.000000e+00 : f32
    %63 = vector.broadcast %cst_30 : f32 to vector<16x128xf32>
    %64 = arith.maximumf %62, %63 : vector<16x128xf32>
    %65 = arith.truncf %64 : vector<16x128xf32> to vector<16x128xbf16>
    %c0_31 = arith.constant 0 : index
    %c0_32 = arith.constant 0 : index
    %66 = vector.load %arg6[%c0_31, %c0_32] : memref<128x128xbf16, #tpu.memory_space<vmem>>, vector<128x128xbf16>
    %cst_33 = arith.constant dense<0.000000e+00> : vector<16x128xf32>
    %67 = tpu.matmul %65, %66, %cst_33 {dimension_numbers = #tpu.dot_dimension_numbers<[1], [0], [0], [1], [0, 0, 1, 1], [], []>} : vector<16x128xbf16>, vector<128x128xbf16>, vector<16x128xf32> -> vector<16x128xf32>
    %c0_34 = arith.constant 0 : index
    %c0_35 = arith.constant 0 : index
    %68 = vector.load %arg9[%c0_34, %c0_35] : memref<1x128xf32, #tpu.memory_space<vmem>>, vector<1x128xf32>
    %69 = vector.broadcast %68 : vector<1x128xf32> to vector<16x128xf32>
    %70 = arith.addf %67, %69 : vector<16x128xf32>
    %71 = arith.extf %1 : vector<16x128xbf16> to vector<16x128xf32>
    %72 = arith.addf %70, %71 : vector<16x128xf32>
    %cst_36 = arith.constant 0.000000e+00 : f32
    %73 = vector.broadcast %cst_36 : f32 to vector<16x128xf32>
    %74 = arith.maximumf %72, %73 : vector<16x128xf32>
    %75 = arith.truncf %74 : vector<16x128xf32> to vector<16x128xbf16>
    %c0_37 = arith.constant 0 : index
    %c0_38 = arith.constant 0 : index
    %c0_39 = arith.constant 0 : index
    %76 = vector.load %arg10[%c0_37, %c0_38, %c0_39] : memref<1x16x128xbf16, #tpu.memory_space<vmem>>, vector<1x16x128xbf16>
    %77 = vector.shape_cast %76 : vector<1x16x128xbf16> to vector<16x128xbf16>
    %78 = vector.shape_cast %75 : vector<16x128xbf16> to vector<1x16x128xbf16>
    tpu.vector_store %arg10[%c0_37, %c0_38, %c0_39], %78 {strides = array<i32>} : memref<1x16x128xbf16, #tpu.memory_space<vmem>>, vector<1x16x128xbf16>,
    return
  }
  func.func @transform_0(%arg0: i32, %arg1: i32) -> (i32, i32, i32) {
    %c0_i32 = arith.constant 0 : i32
    %c0_i32_0 = arith.constant 0 : i32
    return %arg1, %arg0, %c0_i32 : i32, i32, i32
  }
  func.func @transform_1(%arg0: i32, %arg1: i32) -> (i32, i32, i32, i32) {
    %c0_i32 = arith.constant 0 : i32
    %c0_i32_0 = arith.constant 0 : i32
    %c0_i32_1 = arith.constant 0 : i32
    return %arg1, %arg0, %c0_i32, %c0_i32_0 : i32, i32, i32, i32
  }
  func.func @transform_2(%arg0: i32, %arg1: i32) -> (i32, i32) {
    %c0_i32 = arith.constant 0 : i32
    %c0_i32_0 = arith.constant 0 : i32
    %c0_i32_1 = arith.constant 0 : i32
    return %c0_i32, %c0_i32_0 : i32, i32
  }
  func.func @transform_3(%arg0: i32, %arg1: i32) -> (i32, i32) {
    %c0_i32 = arith.constant 0 : i32
    %c0_i32_0 = arith.constant 0 : i32
    %c0_i32_1 = arith.constant 0 : i32
    return %c0_i32, %c0_i32_0 : i32, i32
  }
  func.func @transform_4(%arg0: i32, %arg1: i32) -> (i32, i32) {
    %c0_i32 = arith.constant 0 : i32
    %c0_i32_0 = arith.constant 0 : i32
    %c0_i32_1 = arith.constant 0 : i32
    return %c0_i32, %c0_i32_0 : i32, i32
  }
  func.func @transform_5(%arg0: i32, %arg1: i32) -> (i32, i32) {
    %c0_i32 = arith.constant 0 : i32
    %c0_i32_0 = arith.constant 0 : i32
    %c0_i32_1 = arith.constant 0 : i32
    return %c0_i32, %c0_i32_0 : i32, i32
  }
  func.func @transform_6(%arg0: i32, %arg1: i32) -> (i32, i32) {
    %c0_i32 = arith.constant 0 : i32
    %c0_i32_0 = arith.constant 0 : i32
    %c0_i32_1 = arith.constant 0 : i32
    return %c0_i32, %c0_i32_0 : i32, i32
  }
  func.func @transform_7(%arg0: i32, %arg1: i32) -> (i32, i32) {
    %c0_i32 = arith.constant 0 : i32
    %c0_i32_0 = arith.constant 0 : i32
    %c0_i32_1 = arith.constant 0 : i32
    return %c0_i32, %c0_i32_0 : i32, i32
  }
  func.func @transform_8(%arg0: i32, %arg1: i32) -> (i32, i32, i32) {
    %c0_i32 = arith.constant 0 : i32
    %c0_i32_0 = arith.constant 0 : i32
    return %arg1, %arg0, %c0_i32 : i32, i32, i32
  }
}

</mosaic_0001>

<bundles_post_ra>
// kernel: tpu_custom_call.1
= control target key start
LH: loop header
LB: loop body
LE: loop exit
PB: predicated region body
PF: predicated region fallthrough
CT: control target
= control target key end

     0   :  { %s2036_s0 = inlined_call_operand.hbm [shape: bf16[2,32,128], index: 0, kind: input, shape index: {}]   ;;  %s2037_s1 = inlined_call_operand.hbm [shape: bf16[2,2,8,128], index: 1, kind: input, shape index: {}]   ;;  %s2038_s2 = inlined_call_operand.hbm [shape: bf16[128,128], index: 2, kind: input, shape index: {}]   ;;  %s2039_s3 = inlined_call_operand.hbm [shape: bf16[384,128], index: 3, kind: input, shape index: {}]   ;;  %s2040_s4 = inlined_call_operand.hbm [shape: bf16[128,128], index: 4, kind: input, shape index: {}]   ;;  %s2041_s5 = inlined_call_operand.vmem [shape: f32[1,128], index: 5, kind: input, shape index: {}]   ;;  %s2042_s6 = inlined_call_operand.vmem [shape: f32[1,128], index: 6, kind: input, shape index: {}]   ;;  %s2043_s7 = inlined_call_operand.vmem [shape: f32[1,128], index: 7, kind: input, shape index: {}]   ;;  %s2044_s8 = inlined_call_operand.hbm [shape: bf16[2,32,128], index: 8, kind: output, shape index: {}]  }
   0x1   :  { %2055 = sst [smem:[#allocation25_spill]] %s2038_s2 }
   0x2   :  { %2056 = sst [smem:[#allocation26_spill]] %s2039_s3 }
   0x3   :  { %2057 = sst [smem:[#allocation27_spill]] %s2040_s4 }
   0x4   :  { %2058 = sst [smem:[#allocation28_spill]] %s2043_s7 }
   0x5   :  { %2059 = sst [smem:[#allocation29_spill]] %s2044_s8 }
   0x6   :  { %13 = vsyncpa [#allocation3], 0 }
   0x7   :  { %15 = vsyncpa [#allocation3 + $0x1], 0 }
   0x8   :  { %16 = vsyncpa [#allocation6], 0 }
   0x9   :  { %18 = vsyncpa [#allocation6 + $0x1], 0 }
   0xa   :  { %19 = vsyncpa [#allocation9], 0 }
   0xb   :  { %20 = vsyncpa [#allocation4], 0 }
   0xc   :  { %22 = vsyncpa [#allocation4 + $0x1], 0  ;;  %s1790_s27 = smov 0   ;;  %s1792_s28 = smov 0  }
   0xd   :  { %s1794_s29 = smov 0   ;;  %s1796_s30 = smov 0  }
   0xe   :  { %s1798_s9 = smov 0   ;;  %s1800_s10 = smov 0  }
   0xf   :  { %s1802_s11 = smov 0   ;;  %s1804_s12 = smov 0  }
  0x10 LB: > { %2060 = sst [smem:[#allocation17_spill]] %s1708_s27  ;;  %s1831_s13 = sadd.s32 4294967295, %s1736_s12   ;;  %s1736_s12 = sphi %s1804_s12, %s28_s12   ;;  %s1732_s11 = sphi %s1802_s11, %s2095_s11   ;;  %s1728_s10 = sphi %s1800_s10, %s2094_s10   ;;  %s1724_s9 = sphi %s1798_s9, %s2093_s9   ;;  %s1720_s30 = sphi %s1796_s30, %s2092_s30   ;;  %s1716_s29 = sphi %s1794_s29, %s2087_s29   ;;  %s1712_s28 = sphi %s1792_s28, %s2091_s28   ;;  %s1708_s27 = sphi %s1790_s27, %s2090_s27  }
  0x11   : > { %2061 = sst [smem:[#allocation18_spill]] %s1716_s29  ;;  %s1118_s14 = sadd.s32 4294967294, %s1736_s12  }
  0x12   : > { %2062 = sst [smem:[#allocation19_spill]] %s1720_s30  ;;  %p62_p0 = scmp.ne.s32.totalorder %s1712_s28, %s1708_s27 }
  0x13   : > { %p63_p1 = scmp.eq.s32.totalorder %s1831_s13, 0  ;;  %p242_p2 = scmp.eq.s32.totalorder %s1831_s13, 3 }
  0x14   : > { %p248_p3 = scmp.eq.s32.totalorder %s1118_s14, 3  ;;  %p1119_p5 = scmp.ge.s32.totalorder %s1736_s12, 1 }
  0x15   : > { %p1840_p4 = por %p63_p1, %p62_p0  ;;  %p255_p7 = scmp.lt.s32.totalorder %s1736_s12, 5 }
  0x16   : > { %p1845_p6 = por %p248_p3, %p62_p0  ;;  %s2066_s2 = sld [smem:[#allocation25_spill]] }
  0x17   : > { %p1853_p8 = pnand %p1119_p5, %p255_p7  ;;  %s1738_s21 = smov [#allocation7]  }
  0x18   : > { %s2064_s16 = scalar_select %p1845_p6, 1, 0 }
  0x19   : > { %p1373_p9 = pneg %p1853_p8  ;;  %s268_s22 = sshll.u32 %s1738_s21, 4  ;;  %s269_s22 = int_to_ptr.vmem [resolvable:$true] %s268_s22 }
  0x1a   : > { %2065 = sst [smem:[#allocation20_spill]] %s2064_s16  ;;  %s2045_s14 = smov 64  }
  0x1b   : > { %p1861_p10 = pnand %p1373_p9, %p63_p1  ;;  %s2069_s3 = sld [smem:[#allocation26_spill]] }
  0x1c   : > { %s266_s19 = sshll.u32 %s2066_s2, 4  ;;  %s2046_s17 = smov 4   ;;  %s267_s19 = int_to_ptr.hbm [resolvable:$true] %s266_s19 }
  0x1d   : > { %1376 = dma.hbm_to_vmem [thread:$0]  (!%p1861_p10), %s267_s19, 1024, %s269_s22, [#allocation6], %s2045_s14, %s2045_s14, %s2046_s17  }
  0x1e   : > { %s1741_s18 = smov [#allocation8]   ;;  %s2070_s4 = sld [smem:[#allocation27_spill]] }
  0x1f   : > { %s282_s21 = sshll.u32 %s1741_s18, 4  ;;  %s37_s22 = sadd.s32 1, %s1728_s10  ;;  %s283_s21 = int_to_ptr.vmem [resolvable:$true] %s282_s21 }
  0x20   : > { %p38_p11 = scmp.ge.s32.totalorder %s37_s22, 2  ;;  %s40_s18 = sadd.s32 1, %s1732_s11 }
  0x21   : > { %s280_s26 = sshll.u32 %s2069_s3, 4  ;;  %s1742_s3 = smov [#allocation10]   ;;  %s281_s26 = int_to_ptr.hbm [resolvable:$true] %s280_s26 }
  0x22   : > { %1379 = dma.hbm_to_vmem [thread:$0]  (!%p1861_p10), %s281_s26, 3072, %s283_s21, [#allocation9], %s2045_s14, %s2045_s14, %s2046_s17  }
  0x23   : > { %s296_s19 = sshll.u32 %s1742_s3, 4  ;;  %s49_s24 = sadd.s32 1, %s1716_s29  ;;  %s297_s19 = int_to_ptr.vmem [resolvable:$true] %s296_s19 }
  0x24   : > { %s294_s2 = sshll.u32 %s2070_s4, 4  ;;  %p56_p12 = scmp.ne.s32.totalorder %s1716_s29, %s1712_s28  ;;  %s295_s2 = int_to_ptr.hbm [resolvable:$true] %s294_s2 }
  0x25   : > { %1382 = dma.hbm_to_vmem [thread:$0]  (!%p1861_p10), %s295_s2, 1024, %s297_s19, [#allocation9], %s2045_s14, %s2045_s14, %s2046_s17  }
  0x26   : > { %s2097_s22 = smov (%p38_p11, %s37_s22), 0  ;;  %s2099_s18 = smov (!%p38_p11, %s40_s18), %s1732_s11 }
  0x27   : > { %2071 = sst [smem:[#allocation21_spill]] %s2097_s22  ;;  %s44_s3 = ssub.s32 %s1728_s10, %s2097_s22 }
  0x28   : > { %p57_p13 = scmp.eq.s32.totalorder %s1736_s12, 0  ;;  %p42_p0 = scmp.ge.s32.totalorder %s2099_s18, 2 }
  0x29   : > { %p1899_p3 = por %p242_p2, %p56_p12  ;;  %p1397_p7 = scmp.lt.s32.totalorder %s1736_s12, 4 }
  0x2a   : > { %p1903_p5 = por %p57_p13, %p56_p12  ;;  %s2101_s18 = smov (%p42_p0, %s2099_s18), 0 }
  0x2b   : > { %s2072_s23 = scalar_select %p1899_p3, 1, 0 }
  0x2c   : > { %2075 = sst [smem:[#allocation23_spill]] %s2101_s18  ;;  %s319_s26 = sand.u32 1, %s1716_s29  }
  0x2d   : > { %2073 = sst [smem:[#allocation22_spill]] %s2072_s23  ;;  %s1125_s21 = sshll.u32 %s1732_s11, 1 }
  0x2e   : > { %s45_s25 = ssub.s32 %s1732_s11, %s2101_s18  ;;  %s1124_s14 = sshll.u32 %s319_s26, 3 }
  0x2f   : > { %s46_s19 = sor.u32 %s45_s25, %s44_s3  ;;  %s1126_s17 = sshll.u32 %s1728_s10, 2 }
  0x30   : > { %p47_p2 = scmp.eq.s32.totalorder %s46_s19, 0  ;;  %s323_s4 = scalar_lea.vmem [#allocation2], %s1124_s14 }
  0x31   : > { %s333_s22 = sshll.u32 %s323_s4, 4  ;;  %s328_s27 = sadd.s32 %s1126_s17, %s1125_s21  ;;  %s334_s22 = int_to_ptr.vmem [resolvable:$true] %s333_s22 }
  0x32   : > { %s1916_s16 = scalar_select %p47_p2, %s1716_s29, %s49_s24  }
  0x33   : > { %s1127_s23 = sshll.u32 %s328_s27, 2  ;;  %p1922_p9 = pnand %p1397_p7, %p1903_p5 }
  0x34   : > { %2076 = sst [smem:[#allocation24_spill]] %s1916_s16  ;;  %s330_s25 = scalar_lea.hbm %s2036_s0, %s1127_s23 }
  0x35   : > { %s343_s19 = sand.u32 1, %s1736_s12   ;;  %s331_s14 = sshll.u32 %s330_s25, 4  ;;  %s332_s14 = int_to_ptr.hbm [resolvable:$true] %s331_s14 }
  0x36   : > { %s320_s4 = scalar_lea.sflag [#allocation3], %s319_s26  ;;  %s2078_s17 = smov 4  }
  0x37   : > { %s2079_s24 = smov 64   ;;  %s1128_s27 = sshll.u32 %s319_s26, 2 }
  0x38   : > { %1386 = dma.hbm_to_vmem [thread:$0]  (!%p1922_p9), %s332_s14, 128, %s334_s22, %s320_s4, %s2079_s24, %s2079_s24, %s2078_s17  }
  0x39   : > { %s1129_s2 = sshll.u32 %s1728_s10, 1  ;;  %s347_s29 = scalar_lea.vmem [#allocation5], %s1128_s27 }
  0x3a   : > { %s351_s21 = sadd.s32 %s1732_s11, %s1129_s2  ;;  %s357_s7 = sshll.u32 %s347_s29, 4  ;;  %s358_s7 = int_to_ptr.vmem [resolvable:$true] %s357_s7 }
  0x3b   : > { %s1130_s16 = sshll.u32 %s351_s21, 2  ;;  %s344_s25 = scalar_lea.sflag [#allocation6], %s343_s19 }
  0x3c   : > { %s353_s23 = scalar_lea.hbm %s2037_s1, %s1130_s16  ;;  %366 = sbr.rel (%p1853_p8) target bundleno = 550 (0x226), region = 52 }
  0x3d   : > { %s355_s3 = sshll.u32 %s353_s23, 4  ;;  %s1945_s22 = sand.u32 (!%p1853_p8), 1, %s1712_s28   ;;  %s356_s3 = int_to_ptr.hbm [resolvable:$true] %s355_s3 }
  0x3e   : > { %1389 = dma.hbm_to_vmem [thread:$0]  (!%p1922_p9), %s356_s3, 64, %s358_s7, %s344_s25  }
  0x3f   : > { %s1132_s29 = sshll.u32 (!%p1853_p8), %s1945_s22, 3  ;;  %s369_s26 = scalar_lea.sflag (!%p1853_p8), [#allocation3], %s1945_s22 }
  0x40   : > { %s1951_s30 = scalar_lea.vmem (!%p1853_p8), [#allocation2], %s1132_s29 }
  0x41   : > { %1687 = dma.done.wait (%p1840_p4), %s369_s26, 128  }
  0x42   : > { %1689 = vsyncadd (%p1840_p4), %s369_s26, 4294967168  ;;  %s378_s7 = sand.u32 1, %s1831_s13   ;;  %s1133_s8 = sshll.u32 %s1945_s22, 2 }
  0x43   : > { %s379_s16 = scalar_lea.sflag [#allocation6], %s378_s7  ;;  %s1959_s20 = scalar_lea.vmem [#allocation5], %s1133_s8 }
  0x44   : > { %1691 = dma.done.wait (%p1840_p4), %s379_s16, 64  }
  0x45   : > { %1693 = vsyncadd (%p1840_p4), %s379_s16, 4294967232 }
  0x46   : > { %1695 = dma.done.wait (%p63_p1), [#allocation6], 1024  }
  0x47   : > { %1697 = vsyncadd (%p63_p1), [#allocation6], 4294966272 }
  0x48   : > { %1699 = dma.done.wait (%p63_p1), [#allocation9], 4096  }
  0x49   : > { %1701 = vsyncadd (%p63_p1), [#allocation9], 4294963200  ;;  %v1317_v0 = vld [vmem:[#allocation7 + $0x38] sm:$0xff]  ;;  %v1316_v1 = vld [vmem:[#allocation7 + $0x30] sm:$0xff]  ;;  %v441_v34 = vlaneseq  ;;  %s1174_s13 = sshll.u32 %s1724_s9, 4  ;;  %p560_p1 = scmp.gt.s32.totalorder %s1724_s9, 0 }
  0x4a   : > { %518 = vmatpush.bf16.msra.mxu0 %v1317_v0  ;;  %546 = vmatpush.bf16.msra.mxu1 %v1317_v0  ;;  %v1333_v2 = vld [vmem:[#allocation8 + $0x78] sm:$0xff]  ;;  %v1332_v4 = vld [vmem:[#allocation8 + $0x70] sm:$0xff]  ;;  %v1315_v6 = vld [vmem:[#allocation7 + $0x28] sm:$0xff]  ;;  %s565_s15 = sadd.s32 16, %s1174_s13  ;;  %v535_v39 = vstv %s1174_s13  ;;  %s2080_s2 = sld [smem:[#allocation19_spill]] }
  0x4b   : > { %v1325_v3 = vld [vmem:[#allocation8 + $0x38] sm:$0xff]  ;;  %833 = vmatpush.bf16.msra.mxu3 %v1333_v2  ;;  %v1324_v5 = vld [vmem:[#allocation8 + $0x30] sm:$0xff]  ;;  %v1331_v7 = vld [vmem:[#allocation8 + $0x68] sm:$0xff]  ;;  %v442_v37 = vshrl.u32 %v441_v34, 7  ;;  %p566_p4 = scmp.lt.s32.totalorder %s565_s15, 24  ;;  %s1304_s21 = sshll.u32 %s1724_s9, 1 }
  0x4c   : > { %819 = vmatpush.bf16.msra.mxu2 %v1325_v3  ;;  %v1314_v8 = vld [vmem:[#allocation7 + $0x20] sm:$0xff]  ;;  %v1313_v9 = vld [vmem:[#allocation7 + $0x18] sm:$0xff]  ;;  %v1312_v10 = vld [vmem:[#allocation7 + $0x10] sm:$0xff]  ;;  %s561_s4 = scalar_select %p560_p1, 1, 0 }
  0x4d   : > { %v1311_v11 = vld [vmem:[#allocation7 + $0x8] sm:$0xff]  ;;  %v1310_v12 = vld [vmem:[#allocation7] sm:$0xff]  ;;  %v1341_v13 = vld [vmem:[#allocation8 + $0xb8] sm:$0xff]  ;;  %v536_v43 = vadd.s32 %v535_v39, %v442_v37  ;;  %s567_s17 = scalar_select %p566_p4, 1, 0  ;;  %v443_v45 = vadd.s32 8, %v442_v37 }
  0x4e   : > { %519 = vmatpush.bf16.msra.mxu0 %v1316_v1  ;;  %547 = vmatpush.bf16.msra.mxu1 %v1316_v1  ;;  %v1309_v14 = vld [vmem:[%s1951_s30] sm:$0xff]  ;;  %v440_v15 = vld [vmem:[%s1959_s20] sm:$0xf]  ;;  %v1330_v18 = vld [vmem:[#allocation8 + $0x60] sm:$0xff]  ;;  %v562_v47 = vstv %s561_s4  ;;  %vm573_vm4 = vcmp.lt.s32.totalorder %v442_v37, 1  ;;  %vm576_vm5 = vcmp.eq.s32.totalorder %v442_v37, 0 }
  0x4f   : > { %834 = vmatpush.bf16.msra.mxu3 %v1332_v4  ;;  %v1340_v16 = vld [vmem:[#allocation8 + $0xb0] sm:$0xff]  ;;  %v1323_v17 = vld [vmem:[#allocation8 + $0x28] sm:$0xff]  ;;  %v1322_v20 = vld [vmem:[#allocation8 + $0x20] sm:$0xff]  ;;  %vm538_vm0 = vcmp.lt.s32.totalorder %v536_v43, 24  ;;  %v568_v48 = vstv %s567_s17  ;;  %v537_v50 = vadd.s32 %v535_v39, %v443_v45  ;;  %vm563_vm1 = vcmp.eq.s32.totalorder %v562_v47, 1  ;;  %s2081_s25 = sld [smem:[#allocation28_spill]] }
  0x50   : > { %820 = vmatpush.bf16.msra.mxu2 %v1324_v5  ;;  %v1339_v19 = vld [vmem:[#allocation8 + $0xa8] sm:$0xff]  ;;  %v1329_v21 = vld [vmem:[#allocation8 + $0x58] sm:$0xff]  ;;  %v1338_v22 = vld [vmem:[#allocation8 + $0xa0] sm:$0xff]  ;;  %vm569_vm2 = vcmp.eq.s32.totalorder %v568_v48, 1  ;;  %vm587_vm6 = vcmp.lt.s32.totalorder %v442_v37, 7  ;;  %vm591_vm7 = vcmp.eq.s32.totalorder %v443_v45, 15 }
  0x51   : > { %v1321_v23 = vld [vmem:[#allocation8 + $0x18] sm:$0xff]  ;;  %v1328_v24 = vld [vmem:[#allocation8 + $0x50] sm:$0xff]  ;;  %v1327_v27 = vld [vmem:[#allocation8 + $0x48] sm:$0xff]  ;;  %vm539_vm3 = vcmp.lt.s32.totalorder %v537_v50, 24  ;;  %s1305_s18 = sshll.u32 %s2080_s2, 2  ;;  %s2082_s20 = sld [smem:[#allocation29_spill]] }
  0x52   : > { %520 = vmatpush.bf16.msra.mxu0 %v1315_v6  ;;  %548 = vmatpush.bf16.msra.mxu1 %v1315_v6  ;;  %v1337_v25 = vld [vmem:[#allocation8 + $0x98] sm:$0xff]  ;;  %v1320_v26 = vld [vmem:[#allocation8 + $0x10] sm:$0xff]  ;;  %v1319_v29 = vld [vmem:[#allocation8 + $0x8] sm:$0xff]  ;;  %s968_s26 = sadd.s32 %s1305_s18, %s1304_s21  ;;  %s435_s15 = scalar_lea.vmem [#allocation11], %s1132_s29 }
  0x53   : > { %835 = vmatpush.bf16.msra.mxu3 %v1331_v7  ;;  %v1336_v28 = vld [vmem:[#allocation8 + $0x90] sm:$0xff]  ;;  %v1326_v30 = vld [vmem:[#allocation8 + $0x40] sm:$0xff]  ;;  %v1335_v31 = vld [vmem:[#allocation8 + $0x88] sm:$0xff]  ;;  %s1306_s7 = sshll.u32 %s968_s26, 2  ;;  %s971_s19 = sshll.u32 %s435_s15, 4  ;;  %s972_s19 = int_to_ptr.vmem [resolvable:$true] %s971_s19 }
  0x54   : > { %821 = vmatpush.bf16.msra.mxu2 %v1323_v17  ;;  %v1318_v32 = vld [vmem:[#allocation8] sm:$0xff]  ;;  %v1349_v35 = vld [vmem:[#allocation10 + $0x38] sm:$0xff]  ;;  %v1348_v36 = vld [vmem:[#allocation10 + $0x30] sm:$0xff] }
  0x55   : > { %v1334_v33 = vld [vmem:[#allocation8 + $0x80] sm:$0xff]  ;;  %v1473_v38 = vld [vmem:[%s2041_s5] ss:$0 sm:$0xff] }
  0x56   : > { %521 = vmatpush.bf16.msra.mxu0 %v1314_v8  ;;  %549 = vmatpush.bf16.msra.mxu1 %v1314_v8  ;;  %v1475_v45 = vld [vmem:[%s2081_s25] ss:$0 sm:$0xff] }
  0x57   : > { %836 = vmatpush.bf16.msra.mxu3 %v1330_v18  ;;  %s970_s13 = scalar_lea.hbm %s2082_s20, %s1306_s7  ;;  %s1646_s29 = scalar_lea.hbm %s2082_s20, 32 }
  0x58   : > { %822 = vmatpush.bf16.msra.mxu2 %v1322_v20  ;;  %s973_s14 = sshll.u32 %s970_s13, 4  ;;  %s974_s14 = int_to_ptr.hbm [resolvable:$true] %s973_s14 }
  0x59   : > { %s1640_s4 = sshra.s32 %s974_s14, 4  ;;  %s1641_s4 = int_to_ptr.hbm [resolvable:$true] %s1640_s4 }
  0x5a   : > { %522 = vmatpush.bf16.msra.mxu0 %v1313_v9  ;;  %550 = vmatpush.bf16.msra.mxu1 %v1313_v9  ;;  %s1642_s17 = scalar_lea.hbm %s1641_s4, 8  ;;  %p1647_p12 = scmp.lt.s32.totalorder %s1641_s4, %s2082_s20 }
  0x5b   : > { %837 = vmatpush.bf16.msra.mxu3 %v1329_v21  ;;  %p1643_p8 = scmp.ne.s32.totalorder %s1641_s4, %s1642_s17  ;;  %p1648_p13 = scmp.lt.s32.totalorder %s1646_s29, %s1642_s17 }
  0x5c   : > { %823 = vmatpush.bf16.msra.mxu2 %v1321_v23  ;;  %v1346_v23 = vld [vmem:[#allocation10 + $0x20] sm:$0xff] }
  0x5d   : > { %p1644_p10 = pnand %p1643_p8, %p1899_p3  ;;  %p1649_p0 = por %p1648_p13, %p1647_p12 }
  0x5e   : > { %523 = vmatpush.bf16.msra.mxu0 %v1312_v10  ;;  %551 = vmatpush.bf16.msra.mxu1 %v1312_v10 }
  0x5f   : > { %838 = vmatpush.bf16.msra.mxu3 %v1328_v24  ;;  %v1345_v24 = vld [vmem:[#allocation10 + $0x18] sm:$0xff]  ;;  %p1645_p11 = pneg %p1644_p10 }
  0x60   : > { %824 = vmatpush.bf16.msra.mxu2 %v1320_v26  ;;  %v1343_v26 = vld [vmem:[#allocation10 + $0x8] sm:$0xff] }
  0x61   : > { %p1650_p5 = pnand %p1649_p0, %p1645_p11 }
  0x62   : > { %524 = vmatpush.bf16.msra.mxu0 %v1311_v11  ;;  %552 = vmatpush.bf16.msra.mxu1 %v1311_v11 }
  0x63   : > { %839 = vmatpush.bf16.msra.mxu3 %v1327_v27  ;;  %v1342_v27 = vld [vmem:[#allocation10] sm:$0xff] }
  0x64   : > { %825 = vmatpush.bf16.msra.mxu2 %v1319_v29 }
  0x66   : > { %525 = vmatpush.bf16.msra.mxu0 %v1310_v12  ;;  %553 = vmatpush.bf16.msra.mxu1 %v1310_v12 }
  0x67   : > { %840 = vmatpush.bf16.msra.mxu3 %v1326_v30 }
  0x68   : > { %826 = vmatpush.bf16.msra.mxu2 %v1318_v32 }
  0x69   : > { %526 = vmatmul.bf16.vlgmr.msra.gmra.mxu0 %v1309_v14  ;;  %554 = vmatmul.bf16.vlgmr.msra.gmra.mxu1 %v440_v15 }
  0x6a   : > { %847 = vmatpush.bf16.msrb.mxu0 %v1341_v13  ;;  %932 = vmatpush.bf16.msrb.mxu1 %v1349_v35 }
  0x6e   : > { %848 = vmatpush.bf16.msrb.mxu0 %v1340_v16  ;;  %933 = vmatpush.bf16.msrb.mxu1 %v1348_v36 }
  0x72   : > { %849 = vmatpush.bf16.msrb.mxu0 %v1339_v19 }
  0x76   : > { %850 = vmatpush.bf16.msrb.mxu0 %v1338_v22  ;;  %v1347_v22 = vld [vmem:[#allocation10 + $0x28] sm:$0xff] }
  0x77   : > { %934 = vmatpush.bf16.msrb.mxu1 %v1347_v22 }
  0x7a   : > { %851 = vmatpush.bf16.msrb.mxu0 %v1337_v25  ;;  %v1344_v25 = vld [vmem:[#allocation10 + $0x10] sm:$0xff] }
  0x7b   : > { %935 = vmatpush.bf16.msrb.mxu1 %v1346_v23 }
  0x7e   : > { %852 = vmatpush.bf16.msrb.mxu0 %v1336_v28  ;;  %v1474_v28 = vld [vmem:[%s2042_s6] ss:$0 sm:$0xff] }
  0x7f   : > { %936 = vmatpush.bf16.msrb.mxu1 %v1345_v24 }
  0x82   : > { %853 = vmatpush.bf16.msrb.mxu0 %v1335_v31 }
  0x83   : > { %937 = vmatpush.bf16.msrb.mxu1 %v1344_v25 }
  0x86   : > { %854 = vmatpush.bf16.msrb.mxu0 %v1334_v33 }
  0x87   : > { %938 = vmatpush.bf16.msrb.mxu1 %v1343_v26 }
  0x8b   : > { %939 = vmatpush.bf16.msrb.mxu1 %v1342_v27 }
  0xe6   : > { %v527_v40 = vpop.f32.mrf.mxu0  ;;  %v555_v41 = vpop.f32.mrf.mxu1 }
  0xe7   : > { %v528_v42 = vadd.f32 %v1473_v38, %v527_v40  ;;  %v556_v44 = vadd.f32 %v1473_v38, %v555_v41 }
  0xe9   : > { %v532_v46 = vmax.f32 %v528_v42, 0.0  ;;  %v559_v49 = vmax.f32 %v556_v44, 0.0 }
  0xeb   : > { %v544_v51 = vsel %vm538_vm0, %v532_v46, 0.0  ;;  %v564_v55 = vsel %vm563_vm1, %v559_v49, 0.0  ;;  %v570_v56 = vsel %vm569_vm2, %v559_v49, 0.0  ;;  %v438_v46 = vld [vmem:[%s1951_s30] sm:$0xff]   ;;  %s957_s30 = scalar_lea.sflag [#allocation4], %s1945_s22 }
  0xec   : > { %v601_v58 = vpack.c.bf16 %v544_v51, %v544_v51  ;;  %v571_v59 = vrot.slane %v544_v51, 7  ;;  %v585_v60 = vrot.slane %v544_v51, 1  ;;  %v582_v61 = vperm.slane %v564_v55, 0 }
  0xed   : > { %v596_v63 = vperm.slane %v570_v56, 1  ;;  %v946_v48 = vunpack.c.l.bf16 %v438_v46  ;;  %v947_v49 = vunpack.c.h.bf16 %v438_v46 }
  0xee   : > { %v529_v52 = vpop.f32.mrf.mxu0  ;;  %v557_v53 = vpop.f32.mrf.mxu1  ;;  %v613_v3 = vunpack.c.l.b16 %v601_v58 }
  0xef   : > { %v530_v54 = vadd.f32 %v1473_v38, %v529_v52 }
  0xf1   : > { %v533_v57 = vmax.f32 %v530_v54, 0.0 }
  0xf3   : > { %v545_v62 = vsel %vm539_vm3, %v533_v57, 0.0 }
  0xf4   : > { %v572_v0 = vrot.slane %v545_v62, 7  ;;  %v586_v1 = vrot.slane %v545_v62, 1  ;;  %v602_v2 = vpack.c.bf16 %v545_v62, %v545_v62 }
  0xf6   : > { %v614_v4 = vunpack.c.l.b16 %v602_v2  ;;  %v574_v5 = vsel %vm573_vm4, %v571_v59, %v572_v0  ;;  %v575_v6 = vsel %vm573_vm4, %v572_v0, %v571_v59  ;;  %v588_v7 = vsel %vm587_vm6, %v585_v60, %v586_v1 }
  0xf7   : > { %v583_v8 = vsel %vm576_vm5, %v582_v61, %v575_v6  ;;  %v600_v9 = vpack.c.bf16 %v574_v5, %v574_v5  ;;  %v589_v10 = vsel %vm587_vm6, %v586_v1, %v585_v60  ;;  %v603_v11 = vpack.c.bf16 %v588_v7, %v588_v7 }
  0xf8   : > { %v615_v12 = vpack.c.b16 %v614_v4, %v613_v3  ;;  %v599_v13 = vpack.c.bf16 %v583_v8, %v583_v8  ;;  %v598_v14 = vsel %vm591_vm7, %v596_v63, %v589_v10 }
  0xf9   : > { %v608_v15 = vunpack.c.l.b16 %v600_v9  ;;  %v604_v16 = vpack.c.bf16 %v598_v14, %v598_v14  ;;  %v619_v17 = vunpack.c.l.b16 %v603_v11 }
  0xfa   : > { %841 = vmatmul.bf16.vlgmr.msra.gmra.mxu3 %v615_v12  ;;  %v607_v18 = vunpack.c.l.b16 %v599_v13 }
  0xfb   : > { %v620_v19 = vunpack.c.l.b16 %v604_v16 }
  0xfc   : > { %v609_v20 = vpack.c.b16 %v608_v15, %v607_v18 }
  0xfd   : > { %v621_v21 = vpack.c.b16 %v620_v19, %v619_v17 }
  0xfe   : > { %827 = vmatmul.bf16.vlgmr.msra.gmra.mxu2 %v609_v20 }
  0xff   : > { %855 = vmatmul.bf16.vlgmr.msrb.gmra.mxu0 %v621_v21 }
 0x17c   : > { %v856_v31 = vpop.f32.mrf.mxu0 }
 0x17d   : > { %v842_v29 = vpop.f32.mrf.mxu3 }
 0x181   : > { %v828_v30 = vpop.f32.mrf.mxu2 }
 0x182   : > { %v829_v32 = vadd.f32 %v1474_v28, %v828_v30 }
 0x184   : > { %v843_v33 = vadd.f32 %v842_v29, %v829_v32  ;;  %v858_v39 = vpop.f32.mrf.mxu0 }
 0x185   : > { %v844_v36 = vpop.f32.mrf.mxu3 }
 0x186   : > { %v857_v37 = vadd.f32 %v856_v31, %v843_v33 }
 0x188   : > { %v861_v41 = vmax.f32 %v857_v37, 0.0 }
 0x189   : > { %v830_v34 = vpop.f32.mrf.mxu2 }
 0x18a   : > { %v831_v35 = vadd.f32 %v1474_v28, %v830_v34 }
 0x18c   : > { %v845_v38 = vadd.f32 %v844_v36, %v831_v35 }
 0x18e   : > { %v859_v40 = vadd.f32 %v858_v39, %v845_v38 }
 0x190   : > { %v862_v42 = vmax.f32 %v859_v40, 0.0 }
 0x192   : > { %v863_v43 = vpack.c.bf16 %v862_v42, %v861_v41 }
 0x194   : > { %940 = vmatmul.bf16.vlgmr.msrb.gmra.mxu1 %v863_v43 }
 0x211   : > { %v941_v44 = vpop.f32.mrf.mxu1 }
 0x212   : > { %v942_v47 = vadd.f32 %v1475_v45, %v941_v44 }
 0x214   : > { %v948_v51 = vadd.f32 %v946_v48, %v942_v47 }
 0x216   : > { %v950_v54 = vmax.f32 %v948_v51, 0.0 }
 0x219   : > { %v943_v50 = vpop.f32.mrf.mxu1 }
 0x21a   : > { %v944_v52 = vadd.f32 %v1475_v45, %v943_v50 }
 0x21c   : > { %v949_v53 = vadd.f32 %v947_v49, %v944_v52 }
 0x21e   : > { %v951_v55 = vmax.f32 %v949_v53, 0.0 }
 0x220   : > { %v1353_v56 = vpack.c.bf16 %v951_v55, %v950_v54 }
 0x222   : > { %1354 = vst [vmem:[%s435_s15] sm:$0xff] %v1353_v56  }
 0x223   : > { %1653 = shalt.err (!%p1650_p5)
}
 0x224   : > { %s1743_s22 = smov 64   ;;  %s1744_s18 = smov 4  }
 0x225   : > { %1371 = dma.vmem_to_hbm [thread:$0]  (%p1899_p3), %s972_s19, 128, %s974_s14, %s957_s30, %s1743_s22, %s1743_s22, %s1744_s18  }
 0x226 PF: > { %s2084_s23 = sld [smem:[#allocation17_spill]]  ;;  %p1401_p7 = scmp.ge.s32.totalorder %s1736_s12, 2 }
 0x228   : > { %p1391_p2 = pnand %p1401_p7, %p1845_p6 }
 0x22a   : > { %p1392_p9 = pneg %p1391_p2 }
 0x22c   : > { %s988_s25 = sand.u32 1, %s2084_s23  }
 0x22d   : > { %s989_s26 = scalar_lea.sflag [#allocation4], %s988_s25 }
 0x22e   : > { %1703 = dma.done.wait (%p1392_p9), %s989_s26, 128  }
 0x22f   : > { %1705 = vsyncadd (%p1392_p9), %s989_s26, 4294967168  ;;  %s28_s12 = sadd.s32 1, %s1736_s12   ;;  %s2086_s7 = sld [smem:[#allocation18_spill]] }
 0x230   : > { %p25_p1 = scmp.ge.s32.totalorder %s28_s12, 6   ;;  %s2087_s29 = sld [smem:[#allocation24_spill]] }
 0x231   : > { %s2088_s8 = sld [smem:[#allocation21_spill]]  ;;  %s2090_s27 = smov %s1712_s28 }
 0x232   : > { %s2089_s16 = sld [smem:[#allocation23_spill]]  ;;  %s2092_s30 = smov %s1728_s10 }
 0x233   : > { %s2093_s9 = smov %s1732_s11 }
 0x234   :  { %27 = sbr.rel (!%p25_p1) target bundleno = 16 (0x10), region = 122 }
 0x235   : > { %s2091_s28 = smov %s2086_s7 }
 0x237   : > { %s2094_s10 = smov %s2088_s8 }
 0x238   : > { %s2095_s11 = smov %s2089_s16 }
 0x239   :  { %995 = vsyncpa [#allocation3], 1 }
 0x23a   :  { %997 = vsyncpa [#allocation3 + $0x1], 1 }
 0x23b   :  { %998 = vsyncpa [#allocation6], 1 }
 0x23c   :  { %1000 = vsyncpa [#allocation6 + $0x1], 1 }
 0x23d   :  { %1001 = vsyncpa [#allocation9], 1 }
 0x23e   :  { %1002 = vsyncpa [#allocation4], 1 }
 0x23f   :  { %1004 = vsyncpa [#allocation4 + $0x1], 1 }

</bundles_post_ra>
